<compile_context>
chip_gen: v6e
topology: v6e:2x2x1
jax: 0.10.0
libtpu: 0.0.40
codegen_flags: <defaults>
</compile_context>

<pallas_src>
import jax
import jax.numpy as jnp
from jax.experimental import pallas as pl
from jax.experimental.pallas import tpu as pltpu

# ---- problem sizes (small, consistent with the module's forward) -----------
B, PAIR, C, H, W = 2, 2, 4, 16, 16  # batch, siamese views, in-channels, spatial
F_OUT = 32                          # backbone feature dim
KH = KW = 3
STRIDE, PAD = 2, 1
HO = (H + 2 * PAD - KH) // STRIDE + 1
WO = (W + 2 * PAD - KW) // STRIDE + 1
N = HO * WO                         # descriptors per image (8*8 = 64)
K = C * KH * KW                     # im2col contraction dim (36)
KP = 128                            # K zero-padded to a full lane width


# ---- glue: im2col (ordering (C, kh, kw), matching OIHW weight flatten) ------
def _im2col(x):
    """x: (Bx, C, H, W) -> patches (Bx, N, C*KH*KW)."""
    bx = x.shape[0]
    xp = jnp.pad(x, ((0, 0), (0, 0), (PAD, PAD), (PAD, PAD)))
    cols = []
    for i in range(KH):
        for j in range(KW):
            cols.append(xp[:, :, i:i + STRIDE * HO:STRIDE, j:j + STRIDE * WO:STRIDE])
    p = jnp.stack(cols, axis=2)                       # (Bx, C, KH*KW, HO, WO)
    p = p.reshape(bx, K, HO, WO)                      # (Bx, K, HO, WO)
    p = jnp.transpose(p, (0, 2, 3, 1))                # (Bx, HO, WO, K)
    return p.reshape(bx, HO * WO, K)                  # (Bx, N, K)


# ---- fused Pallas kernel: conv-mm + bias + ReLU + normalize + cosine --------
def _siamese_fused_kernel(p_ref, w_ref, b_ref, o_ref):
    # p_ref: (1, 2N, KP)  both views' patches for one sample
    # w_ref: (KP, F_OUT)  pre-transposed, zero-padded conv weight
    # b_ref: (1, F_OUT)   bias
    # o_ref: (1, N, N)    pairwise cosine logits for this sample
    feats = jnp.dot(p_ref[0], w_ref[...], preferred_element_type=jnp.float32)
    feats = jnp.maximum(feats + b_ref[...], 0.0)       # (2N, F): conv + bias + ReLU

    a = feats[:N, :]                                   # view-0 descriptors (N, F)
    b = feats[N:, :]                                   # view-1 descriptors (N, F)

    # F.normalize(x, dim=1): x / clamp_min(||x||_2, 1e-12)  ==  x * rsqrt(max(sumsq, 1e-24))
    inv_a = jax.lax.rsqrt(jnp.maximum(jnp.sum(a * a, axis=-1, keepdims=True), 1e-24))
    inv_b = jax.lax.rsqrt(jnp.maximum(jnp.sum(b * b, axis=-1, keepdims=True), 1e-24))
    an = a * inv_a
    bn = b * inv_b

    # cosine matrix: contract last dim of both operands (no bn.T relayout)
    o_ref[0] = jax.lax.dot_general(
        an, bn, dimension_numbers=(((1,), (1,)), ((), ())),
        preferred_element_type=jnp.float32)


def _siamese_pallas(patches, w_t, bias):
    return pl.pallas_call(
        _siamese_fused_kernel,
        out_shape=jax.ShapeDtypeStruct((B, N, N), jnp.float32),
        grid=(B,),
        in_specs=[
            pl.BlockSpec((1, PAIR * N, KP), lambda i: (i, 0, 0)),
            pl.BlockSpec((KP, F_OUT), lambda i: (0, 0)),
            pl.BlockSpec((1, F_OUT), lambda i: (0, 0)),
        ],
        out_specs=pl.BlockSpec((1, N, N), lambda i: (i, 0, 0)),
        compiler_params=pltpu.CompilerParams(dimension_semantics=("parallel",)),
    )(patches, w_t, bias)


# ---- SiameseNet forward -----------------------------------------------------
# Note: neck is an empty nn.Sequential (dropout=False, using_insightface=False),
# so `if self.neck:` is False and the neck is skipped.
# TODO(synk): nn.Dropout / AdaptiveAvgPool neck branch (using_insightface=True)
#             not implemented; inactive in this configuration.
@jax.jit
def siamese_forward(data, w_flat, bias):
    # data.transpose(0, 1) then map over dim 0  <=>  views data[:, 0], data[:, 1].
    # Build both views' im2col patches in one pass; per sample, rows 0..N-1 are
    # view 0 and rows N..2N-1 are view 1.
    x = data.reshape(B * PAIR, C, H, W)
    patches = _im2col(x).reshape(B, PAIR * N, K)                    # (B, 2N, K)
    patches = jnp.pad(patches, ((0, 0), (0, 0), (0, KP - K)))       # lane-dense K
    w_t = jnp.pad(w_flat.T, ((0, KP - K), (0, 0)))                  # (KP, F_OUT)
    return _siamese_pallas(patches, w_t, bias)                      # (B, N, N)


# ---- pure-JAX reference for sanity checking ---------------------------------
def _reference(data, w_flat, bias):
    w4 = w_flat.reshape(F_OUT, C, KH, KW)

    def bb(x):
        y = jax.lax.conv_general_dilated(
            x, w4, window_strides=(STRIDE, STRIDE),
            padding=((PAD, PAD), (PAD, PAD)),
            dimension_numbers=("NCHW", "OIHW", "NCHW"))
        y = jnp.maximum(y + bias.reshape(1, F_OUT, 1, 1), 0.0)
        return jnp.transpose(y, (0, 2, 3, 1)).reshape(B, N, F_OUT)

    def norm(t):
        return t / jnp.maximum(jnp.linalg.norm(t, axis=-1, keepdims=True), 1e-12)

    l0, l1 = bb(data[:, 0]), bb(data[:, 1])
    return jnp.einsum("bnf,bmf->bnm", norm(l0), norm(l1))


if __name__ == "__main__":
    key = jax.random.PRNGKey(0)
    k_data, k_w, k_b = jax.random.split(key, 3)

    data = jax.random.normal(k_data, (B, PAIR, C, H, W), dtype=jnp.float32)
    # deterministic synthetic backbone params (Conv2d(C, F_OUT, 3, stride=2, pad=1))
    w_flat = jax.random.normal(k_w, (F_OUT, K), dtype=jnp.float32) * 0.1
    bias = jax.random.normal(k_b, (1, F_OUT), dtype=jnp.float32) * 0.1

    logits = siamese_forward(data, w_flat, bias)
    logits = jax.block_until_ready(logits)

    ref = _reference(data, w_flat, bias)
    assert logits.shape == (B, N, N), logits.shape
    assert bool(jnp.all(jnp.isfinite(logits)))
    # slightly relaxed tolerance: in-kernel rsqrt vs. reference sqrt+divide path
    assert bool(jnp.allclose(logits, ref, atol=1e-4, rtol=1e-4)), \
        float(jnp.max(jnp.abs(logits - ref)))

    print("KERNEL_OK")
</pallas_src>

<mosaic_0001>
module attributes {stable_mosaic.version = 11 : i64} {
  func.func @_siamese_fused_kernel(%arg0: i32, %arg1: memref<1x128x128xf32, #tpu.memory_space<vmem>>, %arg2: memref<128x32xf32, #tpu.memory_space<vmem>>, %arg3: memref<1x32xf32, #tpu.memory_space<vmem>>, %arg4: memref<1x64x64xf32, #tpu.memory_space<vmem>>) attributes {dimension_semantics = [#tpu.dimension_semantics<parallel>], iteration_bounds = array<i64: 2>, scalar_prefetch = 0 : i64, scratch_operands = 0 : i64, tpu.core_type = #tpu.core_type<tc>, window_params = [{transform_indices = @transform_0, window_bounds = array<i64: 1, 128, 128>}, {pipeline_mode = #tpu.pipeline_mode<synchronous>, transform_indices = @transform_1, window_bounds = array<i64: 128, 32>}, {pipeline_mode = #tpu.pipeline_mode<synchronous>, transform_indices = @transform_2, window_bounds = array<i64: 1, 32>}, {transform_indices = @transform_3, window_bounds = array<i64: 1, 64, 64>}]} {
    %c0 = arith.constant 0 : index
    %c0_0 = arith.constant 0 : index
    %c0_1 = arith.constant 0 : index
    %0 = vector.load %arg1[%c0, %c0_0, %c0_1] : memref<1x128x128xf32, #tpu.memory_space<vmem>>, vector<1x128x128xf32>
    %1 = vector.shape_cast %0 : vector<1x128x128xf32> to vector<128x128xf32>
    %c0_2 = arith.constant 0 : index
    %c0_3 = arith.constant 0 : index
    %2 = vector.load %arg2[%c0_2, %c0_3] : memref<128x32xf32, #tpu.memory_space<vmem>>, vector<128x32xf32>
    %cst = arith.constant dense<0.000000e+00> : vector<128x32xf32>
    %3 = tpu.matmul %1, %2, %cst {dimension_numbers = #tpu.dot_dimension_numbers<[1], [0], [0], [1], [0, 0, 1, 1], [], []>} : vector<128x128xf32>, vector<128x32xf32>, vector<128x32xf32> -> vector<128x32xf32>
    %c0_4 = arith.constant 0 : index
    %c0_5 = arith.constant 0 : index
    %4 = vector.load %arg3[%c0_4, %c0_5] : memref<1x32xf32, #tpu.memory_space<vmem>>, vector<1x32xf32>
    %5 = vector.broadcast %4 : vector<1x32xf32> to vector<128x32xf32>
    %6 = arith.addf %3, %5 : vector<128x32xf32>
    %cst_6 = arith.constant 0.000000e+00 : f32
    %7 = vector.broadcast %cst_6 : f32 to vector<128x32xf32>
    %8 = arith.maximumf %6, %7 : vector<128x32xf32>
    %9 = vector.extract_strided_slice %8 {offsets = [0, 0], sizes = [64, 32], strides = [1, 1]} : vector<128x32xf32> to vector<64x32xf32>
    %10 = vector.extract_strided_slice %8 {offsets = [64, 0], sizes = [64, 32], strides = [1, 1]} : vector<128x32xf32> to vector<64x32xf32>
    %11 = arith.mulf %9, %9 : vector<64x32xf32>
    %cst_7 = arith.constant dense<0.000000e+00> : vector<64xf32>
    %12 = vector.multi_reduction <add>, %11, %cst_7 [1] : vector<64x32xf32> to vector<64xf32>
    %13 = vector.shape_cast %12 : vector<64xf32> to vector<64x1xf32>
    %cst_8 = arith.constant 1.000000e-24 : f32
    %14 = vector.broadcast %cst_8 : f32 to vector<64x1xf32>
    %15 = arith.maximumf %13, %14 : vector<64x1xf32>
    %16 = math.rsqrt %15 : vector<64x1xf32>
    %17 = arith.mulf %10, %10 : vector<64x32xf32>
    %cst_9 = arith.constant dense<0.000000e+00> : vector<64xf32>
    %18 = vector.multi_reduction <add>, %17, %cst_9 [1] : vector<64x32xf32> to vector<64xf32>
    %19 = vector.shape_cast %18 : vector<64xf32> to vector<64x1xf32>
    %cst_10 = arith.constant 1.000000e-24 : f32
    %20 = vector.broadcast %cst_10 : f32 to vector<64x1xf32>
    %21 = arith.maximumf %19, %20 : vector<64x1xf32>
    %22 = math.rsqrt %21 : vector<64x1xf32>
    %23 = vector.broadcast %16 : vector<64x1xf32> to vector<64x32xf32>
    %24 = arith.mulf %9, %23 : vector<64x32xf32>
    %25 = vector.broadcast %22 : vector<64x1xf32> to vector<64x32xf32>
    %26 = arith.mulf %10, %25 : vector<64x32xf32>
    %cst_11 = arith.constant dense<0.000000e+00> : vector<64x64xf32>
    %27 = tpu.matmul %24, %26, %cst_11 {dimension_numbers = #tpu.dot_dimension_numbers<[1], [1], [0], [0], [0, 0, 1, 0], [], []>} : vector<64x32xf32>, vector<64x32xf32>, vector<64x64xf32> -> vector<64x64xf32>
    %c0_12 = arith.constant 0 : index
    %c0_13 = arith.constant 0 : index
    %c0_14 = arith.constant 0 : index
    %28 = vector.load %arg4[%c0_12, %c0_13, %c0_14] : memref<1x64x64xf32, #tpu.memory_space<vmem>>, vector<1x64x64xf32>
    %29 = vector.shape_cast %28 : vector<1x64x64xf32> to vector<64x64xf32>
    %30 = vector.shape_cast %27 : vector<64x64xf32> to vector<1x64x64xf32>
    tpu.vector_store %arg4[%c0_12, %c0_13, %c0_14], %30 {strides = array<i32>} : memref<1x64x64xf32, #tpu.memory_space<vmem>>, vector<1x64x64xf32>,
    return
  }
  func.func @transform_0(%arg0: i32) -> (i32, i32, i32) {
    %c0_i32 = arith.constant 0 : i32
    %c0_i32_0 = arith.constant 0 : i32
    %c0_i32_1 = arith.constant 0 : i32
    return %arg0, %c0_i32, %c0_i32_0 : i32, i32, i32
  }
  func.func @transform_1(%arg0: i32) -> (i32, i32) {
    %c0_i32 = arith.constant 0 : i32
    %c0_i32_0 = arith.constant 0 : i32
    %c0_i32_1 = arith.constant 0 : i32
    return %c0_i32, %c0_i32_0 : i32, i32
  }
  func.func @transform_2(%arg0: i32) -> (i32, i32) {
    %c0_i32 = arith.constant 0 : i32
    %c0_i32_0 = arith.constant 0 : i32
    %c0_i32_1 = arith.constant 0 : i32
    return %c0_i32, %c0_i32_0 : i32, i32
  }
  func.func @transform_3(%arg0: i32) -> (i32, i32, i32) {
    %c0_i32 = arith.constant 0 : i32
    %c0_i32_0 = arith.constant 0 : i32
    %c0_i32_1 = arith.constant 0 : i32
    return %arg0, %c0_i32, %c0_i32_0 : i32, i32, i32
  }
}

</mosaic_0001>

<bundles_post_ra>
// kernel: siamese_forward.1
= control target key start
LH: loop header
LB: loop body
LE: loop exit
PB: predicated region body
PF: predicated region fallthrough
CT: control target
= control target key end

     0   :  { %8 = vsyncpa [#allocation3], 0  ;;  %s1367_s0 = inlined_call_operand.vmem [shape: f32[2,128,128], index: 0, kind: input, shape index: {}]   ;;  %s1368_s1 = inlined_call_operand.vmem [shape: f32[128,32], index: 1, kind: input, shape index: {}]   ;;  %s1369_s2 = inlined_call_operand.vmem [shape: f32[1,32], index: 2, kind: input, shape index: {}]   ;;  %s1370_s3 = inlined_call_operand.hbm [shape: f32[2,64,64], index: 3, kind: output, shape index: {}]  }
   0x1   :  { %10 = vsyncpa [#allocation3 + $0x1], 0  ;;  %s1041_s12 = smov 0   ;;  %s1043_s13 = smov 0  }
   0x2   :  { %s1045_s14 = smov 0   ;;  %s1047_s15 = smov 0  }
   0x3 LB: > { %s1062_s16 = sadd.s32 4294967295, %s1016_s15   ;;  %s720_s17 = sadd.s32 4294967294, %s1016_s15   ;;  %s1016_s15 = sphi %s1047_s15, %s1376_s15   ;;  %s1012_s14 = sphi %s1045_s14, %s1375_s14   ;;  %s1008_s13 = sphi %s1043_s13, %s1374_s13   ;;  %s1004_s12 = sphi %s1041_s12, %s1373_s12  }
   0x4   : > { %s1066_s18 = sadd.s32 1, %s1016_s15   ;;  %s91_s19 = sadd.s32 1, %s1012_s14 }
   0x5   : > { %s88_s20 = ssub.s32 %s1016_s15, %s1066_s18  ;;  %p101_p0 = scmp.ne.s32.totalorder %s1012_s14, %s1008_s13 }
   0x6   : > { %p89_p1 = scmp.eq.s32.totalorder %s88_s20, 0  ;;  %p102_p2 = scmp.eq.s32.totalorder %s1062_s16, 1 }
   0x7   : > { %p107_p3 = scmp.ne.s32.totalorder %s1008_s13, %s1004_s12  ;;  %p108_p4 = scmp.eq.s32.totalorder %s720_s17, 1 }
   0x8   : > { %s1077_s21 = scalar_select %p89_p1, %s1012_s14, %s91_s19  }
   0x9   : > { %p1079_p5 = por %p102_p2, %p101_p0  ;;  %p1083_p6 = por %p108_p4, %p107_p3 }
   0xa   : > { %p723_p7 = scmp.ge.s32.totalorder %s1016_s15, 1  ;;  %p140_p8 = scmp.lt.s32.totalorder %s1016_s15, 3 }
   0xc   : > { %p141_p9 = pnand %p723_p7, %p140_p8 }
   0xd   : > { %p164_p10 = scmp.lt.s32.totalorder (!%p141_p9), %s1062_s16, 1  ;;  %s1018_s10 = smov (!%p141_p9), [#allocation2]  }
   0xe   : > { %144 = sbr.rel (%p141_p9) target bundleno = 689 (0x2b1), region = 32  ;;  %s960_s11 = sshll.u32 (!%p141_p9), %s1018_s10, 4  ;;  %s961_s11 = int_to_ptr.vmem [resolvable:$false] %s960_s11 }
   0xf   : > { %s962_s17 = scalar_lea.vmem (!%p141_p9), %s961_s11, 2048 }
  0x13   : > { %v200_v0 = vld [vmem:[%s1368_s1 + $0x78] sm:$0xff]  ;;  %v199_v1 = vld [vmem:[%s1368_s1 + $0x70] sm:$0xff]  ;;  %v198_v2 = vld [vmem:[%s1368_s1 + $0x68] sm:$0xff]  ;;  %s165_s30 = scalar_select %p164_p10, %s1062_s16, 1  ;;  %vm377_vm0 = vcmask 261120   ;;  %vm635_vm1 = vcmask 523264  }
  0x14   : > { %799 = vmatprep.subr.mxu0 %v200_v0  ;;  %v197_v3 = vld [vmem:[%s1368_s1 + $0x60] sm:$0xff]  ;;  %v196_v4 = vld [vmem:[%s1368_s1 + $0x58] sm:$0xff]  ;;  %v195_v6 = vld [vmem:[%s1368_s1 + $0x50] sm:$0xff] }
  0x15   : > { %800 = vmatpush3.msra.mxu0 %v200_v0  ;;  %s749_s6 = sshll.u32 %s165_s30, 7  ;;  %v194_v7 = vld [vmem:[%s1368_s1 + $0x48] sm:$0xff]  ;;  %v193_v8 = vld [vmem:[%s1368_s1 + $0x40] sm:$0xff]  ;;  %v192_v9 = vld [vmem:[%s1368_s1 + $0x38] sm:$0xff]  ;;  %s750_s30 = sshll.u32 %s1062_s16, 10 }
  0x16   : > { %801 = vmatprep.subr.mxu0 %v199_v1  ;;  %s1106_s9 = scalar_lea.vmem %s1367_s0, %s749_s6  ;;  %v191_v10 = vld [vmem:[%s1368_s1 + $0x30] sm:$0xff]  ;;  %v190_v11 = vld [vmem:[%s1368_s1 + $0x28] sm:$0xff]  ;;  %v189_v12 = vld [vmem:[%s1368_s1 + $0x20] sm:$0xff]  ;;  %s1321_s7 = scalar_lea.hbm %s1370_s3, %s750_s30 }
  0x17   : > { %802 = vmatpush3.msra.mxu0 %v199_v1  ;;  %v169_v5 = vld [vmem:[%s1106_s9] sm:$0xff]  ;;  %v188_v13 = vld [vmem:[%s1368_s1 + $0x18] sm:$0xff]  ;;  %v187_v14 = vld [vmem:[%s1368_s1 + $0x10] sm:$0xff] }
  0x18   : > { %803 = vmatprep.subr.mxu0 %v198_v2  ;;  %831 = vmatprep.mubr.f32.mxu0 %v169_v5  ;;  %v186_v15 = vld [vmem:[%s1368_s1 + $0x8] sm:$0xff]  ;;  %v185_v16 = vld [vmem:[%s1368_s1] sm:$0xff]  ;;  %v171_v18 = vld [vmem:[%s1106_s9 + $0x10] sm:$0xff] }
  0x19   : > { %804 = vmatpush3.msra.mxu0 %v198_v2  ;;  %v170_v17 = vld [vmem:[%s1106_s9 + $0x8] sm:$0xff]  ;;  %v172_v19 = vld [vmem:[%s1106_s9 + $0x18] sm:$0xff]  ;;  %v173_v20 = vld [vmem:[%s1106_s9 + $0x20] sm:$0xff] }
  0x1a   : > { %805 = vmatprep.subr.mxu0 %v197_v3  ;;  %v174_v21 = vld [vmem:[%s1106_s9 + $0x28] sm:$0xff]  ;;  %v175_v22 = vld [vmem:[%s1106_s9 + $0x30] sm:$0xff]  ;;  %v176_v23 = vld [vmem:[%s1106_s9 + $0x38] sm:$0xff] }
  0x1b   : > { %806 = vmatpush3.msra.mxu0 %v197_v3  ;;  %v177_v24 = vld [vmem:[%s1106_s9 + $0x40] sm:$0xff]  ;;  %v178_v25 = vld [vmem:[%s1106_s9 + $0x48] sm:$0xff]  ;;  %v179_v26 = vld [vmem:[%s1106_s9 + $0x50] sm:$0xff] }
  0x1c   : > { %807 = vmatprep.subr.mxu0 %v196_v4  ;;  %v180_v27 = vld [vmem:[%s1106_s9 + $0x58] sm:$0xff]  ;;  %v181_v28 = vld [vmem:[%s1106_s9 + $0x60] sm:$0xff]  ;;  %v182_v29 = vld [vmem:[%s1106_s9 + $0x68] sm:$0xff] }
  0x1d   : > { %808 = vmatpush3.msra.mxu0 %v196_v4  ;;  %v183_v30 = vld [vmem:[%s1106_s9 + $0x70] sm:$0xff]  ;;  %v184_v31 = vld [vmem:[%s1106_s9 + $0x78] sm:$0xff]  ;;  %v1169_v44 = vld [vmem:[%s1369_s2] ss:$0 sm:$0xff]  ;;  %s161_s9 = sand.u32 1, %s1008_s13  }
  0x1e   : > { %809 = vmatprep.subr.mxu0 %v195_v6  ;;  %s724_s28 = sshll.u32 %s161_s9, 6  ;;  %s1327_s16 = scalar_lea.sflag [#allocation3], %s161_s9 }
  0x1f   : > { %810 = vmatpush3.msra.mxu0 %v195_v6  ;;  %s163_s29 = scalar_lea.vmem [#allocation2], %s724_s28 }
  0x20   : > { %811 = vmatprep.subr.mxu0 %v194_v7  ;;  %s658_s4 = sshll.u32 %s163_s29, 4  ;;  %s1323_s4 = int_to_ptr.vmem [resolvable:$true] %s658_s4 }
  0x21   : > { %812 = vmatpush3.msra.mxu0 %v194_v7  ;;  %s956_s8 = scalar_lea.vmem %s1323_s4, 1024  ;;  %p963_p0 = scmp.lt.s32.totalorder %s1323_s4, %s961_s11 }
  0x22   : > { %813 = vmatprep.subr.mxu0 %v193_v8  ;;  %p957_p11 = scmp.ne.s32.totalorder %s1323_s4, %s956_s8  ;;  %p964_p1 = scmp.lt.s32.totalorder %s962_s17, %s956_s8 }
  0x23   : > { %814 = vmatpush3.msra.mxu0 %v193_v8 }
  0x24   : > { %815 = vmatprep.subr.mxu0 %v192_v9  ;;  %p958_p12 = pnand %p957_p11, %p1079_p5  ;;  %p965_p2 = por %p964_p1, %p963_p0 }
  0x25   : > { %816 = vmatpush3.msra.mxu0 %v192_v9 }
  0x26   : > { %817 = vmatprep.subr.mxu0 %v191_v10  ;;  %p959_p13 = pneg %p958_p12 }
  0x27   : > { %818 = vmatpush3.msra.mxu0 %v191_v10 }
  0x28   : > { %819 = vmatprep.subr.mxu0 %v190_v11  ;;  %p966_p3 = pnand %p965_p2, %p959_p13 }
  0x29   : > { %820 = vmatpush3.msra.mxu0 %v190_v11 }
  0x2a   : > { %821 = vmatprep.subr.mxu0 %v189_v12 }
  0x2b   : > { %822 = vmatpush3.msra.mxu0 %v189_v12 }
  0x2c   : > { %823 = vmatprep.subr.mxu0 %v188_v13 }
  0x2d   : > { %824 = vmatpush3.msra.mxu0 %v188_v13 }
  0x2e   : > { %825 = vmatprep.subr.mxu0 %v187_v14 }
  0x2f   : > { %826 = vmatpush3.msra.mxu0 %v187_v14 }
  0x30   : > { %827 = vmatprep.subr.mxu0 %v186_v15 }
  0x31   : > { %828 = vmatpush3.msra.mxu0 %v186_v15 }
  0x32   : > { %829 = vmatprep.subr.mxu0 %v185_v16 }
  0x33   : > { %830 = vmatpush3.msra.mxu0 %v185_v16 }
  0x34   : > { %832 = vmatmul.mubr.f32.vlgmr.msra.gmra.mxu0 %v170_v17 }
  0x35   : > { %834 = vmatprep.mubr.f32.mxu0 %v171_v18 }
  0x38   : > { %835 = vmatmul.mubr.f32.gmra.mxu0 %v172_v19 }
  0x39   : > { %837 = vmatprep.mubr.f32.mxu0 %v173_v20 }
  0x3c   : > { %838 = vmatmul.mubr.f32.gmra.mxu0 %v174_v21 }
  0x3d   : > { %840 = vmatprep.mubr.f32.mxu0 %v175_v22 }
  0x40   : > { %841 = vmatmul.mubr.f32.gmra.mxu0 %v176_v23 }
  0x41   : > { %843 = vmatprep.mubr.f32.mxu0 %v177_v24 }
  0x44   : > { %844 = vmatmul.mubr.f32.gmra.mxu0 %v178_v25 }
  0x45   : > { %846 = vmatprep.mubr.f32.mxu0 %v179_v26 }
  0x48   : > { %847 = vmatmul.mubr.f32.gmra.mxu0 %v180_v27 }
  0x49   : > { %849 = vmatprep.mubr.f32.mxu0 %v181_v28 }
  0x4c   : > { %850 = vmatmul.mubr.f32.gmra.mxu0 %v182_v29 }
  0x4d   : > { %852 = vmatprep.mubr.f32.mxu0 %v183_v30 }
  0x50   : > { %853 = vmatmul.mubr.f32.gmra.mxu0 %v184_v31 }
  0xf4   : > { %v833_v32 = vpop.f32.mrf.mxu0 }
  0xf5   : > { %v280_v1 = vadd.f32 %v833_v32, %v1169_v44 }
  0xf6   : > { %v274_v33 = vpop.f32.mrf.mxu0 }
  0xf7   : > { %v1207_v9 = vmax.f32 %v280_v1, 0.0  ;;  %v275_v10 = vadd.f32 %v1169_v44, %v274_v33 }
  0xf8   : > { %v836_v34 = vpop.f32.mrf.mxu0 }
  0xf9   : > { %v290_v11 = vadd.f32 %v836_v34, %v1169_v44  ;;  %v1219_v17 = vmax.f32 %v275_v10, 0.0  ;;  %v370_v20 = vmul.f32 %v1207_v9, %v1207_v9 }
  0xfa   : > { %v284_v35 = vpop.f32.mrf.mxu0 }
  0xfb   : > { %v1221_v18 = vmax.f32 %v290_v11, 0.0  ;;  %v285_v19 = vadd.f32 %v1169_v44, %v284_v35  ;;  %v381_v26 = vsel %vm377_vm0, %v370_v20, 0.0  ;;  %v369_v28 = vmul.f32 %v1219_v17, %v1219_v17 }
  0xfc   : > { %v839_v36 = vpop.f32.mrf.mxu0 }
  0xfd   : > { %v300_v21 = vadd.f32 %v839_v36, %v1169_v44  ;;  %v1231_v25 = vmax.f32 %v285_v19, 0.0  ;;  %v372_v27 = vmul.f32 %v1221_v18, %v1221_v18  ;;  %v378_v34 = vsel %vm377_vm0, %v369_v28, 0.0 }
  0xfe   : > { %v1160_v37 = vpop.f32.mrf.mxu0 }
  0xff   : > { %v1238_v29 = vmax.f32 %v300_v21, 0.0  ;;  %v295_v30 = vadd.f32 %v1169_v44, %v1160_v37  ;;  %v387_v33 = vsel %vm377_vm0, %v372_v27, 0.0  ;;  %v371_v35 = vmul.f32 %v1231_v25, %v1231_v25 }
 0x100   : > { %v1162_v38 = vpop.f32.mrf.mxu0 }
 0x101   : > { %v310_v31 = vadd.f32 %v1162_v38, %v1169_v44  ;;  %v1249_v36 = vmax.f32 %v295_v30, 0.0  ;;  %v374_v38 = vmul.f32 %v1238_v29, %v1238_v29 }
 0x102   : > { %v1164_v39 = vpop.f32.mrf.mxu0 }
 0x103   : > { %v305_v37 = vadd.f32 %v1169_v44, %v1164_v39 }
 0x104   : > { %v845_v40 = vpop.f32.mrf.mxu0 }
 0x105   : > { %v320_v2 = vadd.f32 %v845_v40, %v1169_v44  ;;  %v1251_v40 = vmax.f32 %v310_v31, 0.0 }
 0x106   : > { %v314_v41 = vpop.f32.mrf.mxu0 }
 0x107   : > { %v315_v55 = vadd.f32 %v1169_v44, %v314_v41  ;;  %v1211_v12 = vmax.f32 %v320_v2, 0.0  ;;  %v384_v41 = vsel %vm377_vm0, %v371_v35, 0.0 }
 0x108   : > { %v848_v42 = vpop.f32.mrf.mxu0 }
 0x109   : > { %v330_v56 = vadd.f32 %v848_v42, %v1169_v44  ;;  %v1197_v3 = vmax.f32 %v315_v55, 0.0  ;;  %v419_v24 = vmul.f32 %v1211_v12, %v1211_v12  ;;  %v1258_v42 = vmax.f32 %v305_v37, 0.0 }
 0x10a   : > { %v324_v43 = vpop.f32.mrf.mxu0 }
 0x10b   : > { %v325_v47 = vadd.f32 %v1169_v44, %v324_v43  ;;  %v1199_v4 = vmax.f32 %v330_v56, 0.0  ;;  %v418_v16 = vmul.f32 %v1197_v3, %v1197_v3  ;;  %v429_v32 = vsel %vm377_vm0, %v419_v24, 0.0 }
 0x10c   : > { %v851_v45 = vpop.f32.mrf.mxu0  ;;  %v393_v43 = vsel %vm377_vm0, %v374_v38, 0.0 }
 0x10d   : > { %v340_v46 = vadd.f32 %v851_v45, %v1169_v44  ;;  %v1183_v57 = vmax.f32 %v325_v47, 0.0  ;;  %v421_v15 = vmul.f32 %v1199_v4, %v1199_v4  ;;  %v426_v23 = vsel %vm377_vm0, %v418_v16, 0.0 }
 0x10e   : > { %v334_v48 = vpop.f32.mrf.mxu0  ;;  %v376_v45 = vmul.f32 %v1251_v40, %v1251_v40  ;;  %v375_v47 = vmul.f32 %v1258_v42, %v1258_v42 }
 0x10f   : > { %v1173_v49 = vmax.f32 %v340_v46, 0.0  ;;  %v335_v50 = vadd.f32 %v1169_v44, %v334_v48  ;;  %v420_v8 = vmul.f32 %v1183_v57, %v1183_v57  ;;  %v435_v22 = vsel %vm377_vm0, %v421_v15, 0.0 }
 0x110   : > { %v854_v51 = vpop.f32.mrf.mxu0  ;;  %v373_v46 = vmul.f32 %v1249_v36, %v1249_v36  ;;  %v399_v39 = vsel %vm377_vm0, %v376_v45, 0.0  ;;  %v396_v48 = vsel %vm377_vm0, %v375_v47, 0.0 }
 0x111   : > { %v1176_v52 = vmax.f32 %v335_v50, 0.0  ;;  %v350_v53 = vadd.f32 %v854_v51, %v1169_v44  ;;  %v423_v54 = vmul.f32 %v1173_v49, %v1173_v49  ;;  %v432_v14 = vsel %vm377_vm0, %v420_v8, 0.0 }
 0x112   : > { %v344_v58 = vpop.f32.mrf.mxu0 }
 0x113   : > { %v1185_v59 = vmax.f32 %v350_v53, 0.0  ;;  %v345_v60 = vadd.f32 %v1169_v44, %v344_v58  ;;  %v441_v61 = vsel %vm377_vm0, %v423_v54, 0.0  ;;  %v422_v62 = vmul.f32 %v1176_v52, %v1176_v52 }
 0x114   : > { %442 = vadd.xlane.f32.xlu1 %v441_v61  ;;  %v390_v44 = vsel %vm377_vm0, %v373_v46, 0.0 }
 0x115   : > { %v1191_v63 = vmax.f32 %v345_v60, 0.0  ;;  %v425_v0 = vmul.f32 %v1185_v59, %v1185_v59  ;;  %v438_v6 = vsel %vm377_vm0, %v422_v62, 0.0 }
 0x117   : > { %v447_v5 = vsel %vm377_vm0, %v425_v0, 0.0  ;;  %v424_v7 = vmul.f32 %v1191_v63, %v1191_v63 }
 0x118   : > { %448 = vadd.xlane.f32.xlu0 %v447_v5  ;;  %439 = vadd.xlane.f32.xlu1 %v438_v6 }
 0x119   : > { %v444_v13 = vsel %vm377_vm0, %v424_v7, 0.0 }
 0x11c   : > { %445 = vadd.xlane.f32.xlu0 %v444_v13  ;;  %433 = vadd.xlane.f32.xlu1 %v432_v14 }
 0x120   : > { %436 = vadd.xlane.f32.xlu0 %v435_v22  ;;  %427 = vadd.xlane.f32.xlu1 %v426_v23 }
 0x124   : > { %430 = vadd.xlane.f32.xlu0 %v429_v32  ;;  %382 = vadd.xlane.f32.xlu1 %v381_v26 }
 0x128   : > { %388 = vadd.xlane.f32.xlu1 %v387_v33  ;;  %379 = vadd.xlane.f32.xlu0 %v378_v34 }
 0x12c   : > { %394 = vadd.xlane.f32.xlu1 %v393_v43  ;;  %385 = vadd.xlane.f32.xlu0 %v384_v41 }
 0x130   : > { %400 = vadd.xlane.f32.xlu1 %v399_v39  ;;  %391 = vadd.xlane.f32.xlu0 %v390_v44 }
 0x134   : > { %397 = vadd.xlane.f32.xlu0 %v396_v48 }
 0x19d   : > { %v443_v50 = vpop.xlane.xlu1 %442 }
 0x19e   : > { %v455_v54 = vmax.f32 %v443_v50, 1e-24 }
 0x1a1   : > { %v449_v51 = vpop.xlane.xlu0 %448  ;;  %v440_v55 = vpop.xlane.xlu1 %439 }
 0x1a2   : > { %v457_v53 = vmax.f32 %v449_v51, 1e-24  ;;  %v454_v60 = vmax.f32 %v440_v55, 1e-24 }
 0x1a4   : > { %924 = vrsqrt.f32 %v457_v53 }
 0x1a5   : > { %v446_v56 = vpop.xlane.xlu0 %445  ;;  %926 = vrsqrt.f32 %v455_v54  ;;  %v434_v61 = vpop.xlane.xlu1 %433 }
 0x1a6   : > { %v456_v58 = vmax.f32 %v446_v56, 1e-24  ;;  %v452_v5 = vmax.f32 %v434_v61, 1e-24 }
 0x1a8   : > { %928 = vrsqrt.f32 %v456_v58 }
 0x1a9   : > { %v437_v62 = vpop.xlane.xlu0 %436  ;;  %930 = vrsqrt.f32 %v454_v60  ;;  %v428_v2 = vpop.xlane.xlu1 %427 }
 0x1aa   : > { %v453_v0 = vmax.f32 %v437_v62, 1e-24  ;;  %v450_v19 = vmax.f32 %v428_v2, 1e-24 }
 0x1ac   : > { %932 = vrsqrt.f32 %v453_v0 }
 0x1ad   : > { %v431_v1 = vpop.xlane.xlu0 %430  ;;  %934 = vrsqrt.f32 %v452_v5  ;;  %v383_v15 = vpop.xlane.xlu1 %382 }
 0x1ae   : > { %v451_v13 = vmax.f32 %v431_v1, 1e-24 }
 0x1b1   : > { %v925_v6 = vpop.eup %924  ;;  %v380_v7 = vpop.xlane.xlu0 %379 }
 0x1b2   : > { %v402_v8 = vmax.f32 %v380_v7, 1e-24  ;;  %v481_v10 = vmul.f32 %v925_v6, %v1185_v59  ;;  %v927_v11 = vpop.eup %926  ;;  %v389_v22 = vpop.xlane.xlu1 %388 }
 0x1b3   : > { %v479_v21 = vmul.f32 %v927_v11, %v1173_v49  ;;  %v405_v32 = vmax.f32 %v389_v22, 1e-24 }
 0x1b4   : > { %855 = vmatprep.subr.msk.mxu1 %vm377_vm0, %v481_v10  ;;  %936 = vrsqrt.f32 %v402_v8 }
 0x1b5   : > { %v929_v14 = vpop.eup %928  ;;  %856 = vmatpush3.xpose.msk.msra.mxu1 %vm377_vm0, %v481_v10  ;;  %938 = vrsqrt.f32 %v451_v13  ;;  %v386_v20 = vpop.xlane.xlu0 %385 }
 0x1b6   : > { %v480_v16 = vmul.f32 %v929_v14, %v1191_v63  ;;  %v931_v59 = vpop.eup %930  ;;  %940 = vrsqrt.f32 %v450_v19  ;;  %v403_v63 = vmax.f32 %v383_v15, 1e-24  ;;  %v404_v27 = vmax.f32 %v386_v20, 1e-24  ;;  %v395_v30 = vpop.xlane.xlu1 %394 }
 0x1b7   : > { %v478_v23 = vmul.f32 %v931_v59, %v1176_v52 }
 0x1b8   : > { %857 = vmatprep.subr.msk.mxu1 %vm377_vm0, %v480_v16  ;;  %942 = vrsqrt.f32 %v403_v63 }
 0x1b9   : > { %858 = vmatpush3.xpose.msk.msra.mxu1 %vm377_vm0, %v480_v16  ;;  %v933_v24 = vpop.eup %932  ;;  %v392_v26 = vpop.xlane.xlu0 %391  ;;  %944 = vrsqrt.f32 %v404_v27 }
 0x1ba   : > { %859 = vmatprep.subr.msk.mxu1 %vm377_vm0, %v479_v21  ;;  %v477_v28 = vmul.f32 %v933_v24, %v1199_v4  ;;  %v935_v49 = vpop.eup %934  ;;  %v406_v52 = vmax.f32 %v392_v26, 1e-24  ;;  %946 = vrsqrt.f32 %v405_v32  ;;  %v407_v4 = vmax.f32 %v395_v30, 1e-24  ;;  %v401_v38 = vpop.xlane.xlu1 %400 }
 0x1bb   : > { %v476_v35 = vmul.f32 %v935_v49, %v1183_v57 }
 0x1bc   : > { %948 = vrsqrt.f32 %v406_v52 }
 0x1bd   : > { %860 = vmatpush3.xpose.msk.msra.mxu1 %vm377_vm0, %v479_v21  ;;  %v398_v34 = vpop.xlane.xlu0 %397  ;;  %950 = vrsqrt.f32 %v407_v4 }
 0x1be   : > { %861 = vmatprep.subr.msk.mxu1 %vm377_vm0, %v478_v23  ;;  %v408_v41 = vmax.f32 %v398_v34, 1e-24 }
 0x1c0   : > { %952 = vrsqrt.f32 %v408_v41 }
 0x1c1   : > { %862 = vmatpush3.xpose.msk.msra.mxu1 %vm377_vm0, %v478_v23  ;;  %v937_v31 = vpop.eup %936 }
 0x1c2   : > { %863 = vmatprep.subr.msk.mxu1 %vm377_vm0, %v477_v28  ;;  %v466_v33 = vmul.f32 %v937_v31, %v1219_v17  ;;  %v939_v37 = vpop.eup %938  ;;  %v409_v17 = vmax.f32 %v401_v38, 1e-24 }
 0x1c3   : > { %v475_v43 = vmul.f32 %v939_v37, %v1211_v12  ;;  %v941_v45 = vpop.eup %940 }
 0x1c4   : > { %871 = vmatprep.mubr.msk.f32.mxu1 %vm377_vm0, %v466_v33  ;;  %v474_v57 = vmul.f32 %v941_v45, %v1197_v3  ;;  %954 = vrsqrt.f32 %v409_v17 }
 0x1c5   : > { %864 = vmatpush3.xpose.msk.msra.mxu1 %vm377_vm0, %v477_v28  ;;  %v943_v46 = vpop.eup %942 }
 0x1c6   : > { %865 = vmatprep.subr.msk.mxu1 %vm377_vm0, %v476_v35  ;;  %v945_v39 = vpop.eup %944  ;;  %v467_v12 = vmul.f32 %v943_v46, %v1207_v9 }
 0x1c7   : > { %v947_v44 = vpop.eup %946  ;;  %v468_v47 = vmul.f32 %v945_v39, %v1231_v25 }
 0x1c8   : > { %v469_v3 = vmul.f32 %v947_v44, %v1221_v18 }
 0x1c9   : > { %866 = vmatpush3.xpose.msk.msra.mxu1 %vm377_vm0, %v476_v35  ;;  %v949_v48 = vpop.eup %948 }
 0x1ca   : > { %867 = vmatprep.subr.msk.mxu1 %vm377_vm0, %v475_v43  ;;  %v951_v50 = vpop.eup %950  ;;  %v470_v51 = vmul.f32 %v949_v48, %v1249_v36 }
 0x1cb   : > { %v471_v9 = vmul.f32 %v951_v50, %v1238_v29 }
 0x1cd   : > { %868 = vmatpush3.xpose.msk.msra.mxu1 %vm377_vm0, %v475_v43  ;;  %v953_v53 = vpop.eup %952 }
 0x1ce   : > { %869 = vmatprep.subr.msk.mxu1 %vm377_vm0, %v474_v57  ;;  %v472_v25 = vmul.f32 %v953_v53, %v1258_v42 }
 0x1d1   : > { %870 = vmatpush3.xpose.msk.msra.mxu1 %vm377_vm0, %v474_v57  ;;  %v955_v54 = vpop.eup %954 }
 0x1d2   : > { %v473_v55 = vmul.f32 %v955_v54, %v1251_v40 }
 0x1d4   : > { %872 = vmatmul.mubr.msk.f32.vlgmr.msra.gmra.mxu1 %vm377_vm0, %v467_v12 }
 0x1d5   : > { %874 = vmatprep.mubr.msk.f32.mxu1 %vm377_vm0, %v468_v47 }
 0x1d8   : > { %875 = vmatmul.mubr.msk.f32.gmra.mxu1 %vm377_vm0, %v469_v3 }
 0x1d9   : > { %877 = vmatprep.mubr.msk.f32.mxu1 %vm377_vm0, %v470_v51 }
 0x1dc   : > { %878 = vmatmul.mubr.msk.f32.gmra.mxu1 %vm377_vm0, %v471_v9 }
 0x1dd   : > { %880 = vmatprep.mubr.msk.f32.mxu1 %vm377_vm0, %v472_v25 }
 0x1e0   : > { %881 = vmatmul.mubr.msk.f32.gmra.mxu1 %vm377_vm0, %v473_v55 }
 0x294   : > { %v873_v18 = vpop.f32.mrf.mxu1 }
 0x295   : > { %637 = vst.msk [vmem:[%s163_s29 + $0x8] sm:$0xff] %vm635_vm1, %v873_v18 }
 0x296   : > { %v596_v29 = vpop.f32.mrf.mxu1 }
 0x297   : > { %636 = vst.msk [vmem:[%s163_s29] sm:$0xff] %vm635_vm1, %v596_v29 }
 0x298   : > { %v876_v36 = vpop.f32.mrf.mxu1 }
 0x299   : > { %639 = vst.msk [vmem:[%s163_s29 + $0x18] sm:$0xff] %vm635_vm1, %v876_v36 }
 0x29a   : > { %v606_v42 = vpop.f32.mrf.mxu1 }
 0x29b   : > { %638 = vst.msk [vmem:[%s163_s29 + $0x10] sm:$0xff] %vm635_vm1, %v606_v42 }
 0x29c   : > { %v879_v40 = vpop.f32.mrf.mxu1 }
 0x29d   : > { %641 = vst.msk [vmem:[%s163_s29 + $0x28] sm:$0xff] %vm635_vm1, %v879_v40 }
 0x29e   : > { %v616_v56 = vpop.f32.mrf.mxu1 }
 0x29f   : > { %640 = vst.msk [vmem:[%s163_s29 + $0x20] sm:$0xff] %vm635_vm1, %v616_v56 }
 0x2a0   : > { %v882_v58 = vpop.f32.mrf.mxu1 }
 0x2a1   : > { %643 = vst.msk [vmem:[%s163_s29 + $0x38] sm:$0xff] %vm635_vm1, %v882_v58 }
 0x2a2   : > { %v626_v60 = vpop.f32.mrf.mxu1 }
 0x2a3   : > { %642 = vst.msk [vmem:[%s163_s29 + $0x30] sm:$0xff] %vm635_vm1, %v626_v60 }
 0x2a4   : > { %969 = shalt.err (!%p966_p3)
}
 0x2a5   : > { %s970_s19 = scalar_lea.hbm %s1321_s7, 1024  ;;  %s974_s25 = scalar_lea.hbm %s1370_s3, 2048 }
 0x2a6   : > { %p971_p4 = scmp.ne.s32.totalorder %s1321_s7, %s970_s19  ;;  %p975_p9 = scmp.lt.s32.totalorder %s1321_s7, %s1370_s3 }
 0x2a7   : > { %p976_p10 = scmp.lt.s32.totalorder %s974_s25, %s970_s19 }
 0x2a8   : > { %p972_p7 = pnand %p971_p4, %p1079_p5 }
 0x2a9   : > { %p977_p11 = por %p976_p10, %p975_p9 }
 0x2aa   : > { %p973_p8 = pneg %p972_p7 }
 0x2ac   : > { %p978_p12 = pnand %p977_p11, %p973_p8 }
 0x2ae   : > { %981 = shalt.err (!%p978_p12)
}
 0x2af   : > { %s1019_s9 = smov 128   ;;  %s1020_s28 = smov 8  }
 0x2b0   : > { %883 = dma.vmem_to_hbm [thread:$0]  (%p1079_p5), %s1323_s4, 1024, %s1321_s7, %s1327_s16, %s1019_s9, %s1019_s9, %s1020_s28  }
 0x2b1 PF: > { %p889_p13 = scmp.ge.s32.totalorder %s1016_s15, 2  ;;  %s673_s29 = sand.u32 1, %s1004_s12  }
 0x2b2   : > { %s674_s30 = scalar_lea.sflag [#allocation3], %s673_s29 }
 0x2b3   : > { %p886_p0 = pnand %p889_p13, %p1083_p6 }
 0x2b5   : > { %p887_p1 = pneg %p886_p0 }
 0x2b7   : > { %999 = dma.done.wait (%p887_p1), %s674_s30, 1024  }
 0x2b8   : > { %1001 = vsyncadd (%p887_p1), %s674_s30, 4294966272  ;;  %p13_p2 = scmp.ge.s32.totalorder %s1066_s18, 4   ;;  %s1373_s12 = smov %s1008_s13 }
 0x2b9   : > { %s1374_s13 = smov %s1012_s14  ;;  %s1375_s14 = smov %s1077_s21 }
 0x2ba   : > { %s1376_s15 = smov %s1066_s18  ;;  %15 = sbr.rel (!%p13_p2) target bundleno = 3 (0x3), region = 67 }
 0x2bf   :  { %679 = vsyncpa [#allocation3], 1 }
 0x2c0   :  { %681 = vsyncpa [#allocation3 + $0x1], 1 }

</bundles_post_ra>
